<compile_context>
chip_gen: v7x
topology: tpu7x:2x2x1
jax: 0.10.0
libtpu: 0.0.40
codegen_flags: <defaults>
</compile_context>

<pallas_src>
import jax
import jax.numpy as jnp
from jax.experimental import pallas as pl
from jax.experimental.pallas import tpu as pltpu


def _round_up(n, m):
    return ((n + m - 1) // m) * m


def mlp_kernel(x_ref, w1_ref, b1_ref, w2_ref, b2_ref, o_ref):
    # Cast the f32 activation tile to bf16 in-kernel (VPU), feeding the MXU
    # with bf16 operands while keeping x at 4 B/elem in HBM (no wrapper pass).
    x_bf = x_ref[...].astype(jnp.bfloat16)
    # fc1: (tb, F) bf16 @ (F, H) bf16 -> f32 accumulate on the MXU.
    h = jnp.dot(x_bf, w1_ref[...], preferred_element_type=jnp.float32)
    # bias + relu in f32 on the VPU.
    h = jnp.maximum(h + b1_ref[...], 0.0)
    # fc2 (N=1): VPU multiply + lane reduction instead of an MXU matmul.
    out = jnp.sum(h * w2_ref[...], axis=-1, keepdims=True)
    # scalar bias from SMEM.
    out = out + b2_ref[0]
    o_ref[...] = out.astype(o_ref.dtype)


def _choose_tile(B, tile_b):
    """Pick the batch-tile row count.

    - multiples of 256 (lane/sublane + MXU-M friendly),
    - a single full-extent block for tiny batches (full-dim exemption),
    - at least two grid steps when the batch allows it, so v7x's two
      TensorCores both receive work on the 'parallel' batch axis.
    """
    tile_b = max(256, _round_up(tile_b, 256))
    if B <= 256:
        return B
    return min(tile_b, _round_up(pl.cdiv(B, 2), 256))


def cnn_model_forward(x_nchw, w1, b1, w2_row, b2, *, tile_b=2048):
    """Fused MLP forward.

    x_nchw : (B, C, H, W) float32  (flattened row-major, like torch .view)
    w1     : (F, H)  float32  (transposed vs. torch fc1.weight)
    b1     : (1, H)  float32
    w2_row : (1, H)  float32  (same layout as torch fc2.weight)
    b2     : (1,)    float32
    returns (B, 1) float32
    """
    B = x_nchw.shape[0]
    x_flat = x_nchw.reshape(B, -1)     # layout no-op; matches torch .view(B, -1)
    F = x_flat.shape[1]
    Hdim = w1.shape[1]

    # Weights are tiny (F*H*2 bytes); one-time bf16 cast, VMEM-resident.
    w1_bf = w1.astype(jnp.bfloat16)

    # Clamp the tile so the f32 x double-buffer stays within a budget that is
    # safe on every generation (v7x has only 64 MiB VMEM / 32 MiB default).
    vmem_input_budget = 32 * 1024 * 1024
    max_tb = max(256, ((vmem_input_budget // 2) // (F * 4)) // 256 * 256)
    tb = _choose_tile(B, min(tile_b, max_tb))
    nb = pl.cdiv(B, tb)                # ragged last block; no jnp.pad pass over x

    out = pl.pallas_call(
        mlp_kernel,
        out_shape=jax.ShapeDtypeStruct((B, 1), jnp.float32),
        grid=(nb,),
        in_specs=[
            pl.BlockSpec((tb, F), lambda i: (i, 0)),            # x tile (f32)
            pl.BlockSpec((F, Hdim), lambda i: (0, 0)),          # W1, resident
            pl.BlockSpec((1, Hdim), lambda i: (0, 0)),          # b1
            pl.BlockSpec((1, Hdim), lambda i: (0, 0)),          # w2 row
            pl.BlockSpec(memory_space=pltpu.MemorySpace.SMEM),  # b2 scalar
        ],
        out_specs=pl.BlockSpec((tb, 1), lambda i: (i, 0)),
        compiler_params=pltpu.CompilerParams(
            dimension_semantics=("parallel",),
            vmem_limit_bytes=40 * 1024 * 1024,
        ),
    )(x_flat, w1_bf, b1, w2_row, b2)

    return out


def init_params(key, input_shape, hidden_units):
    """Deterministic init mimicking nn.Linear's U(-1/sqrt(fan_in), 1/sqrt(fan_in))."""
    k1, k2, k3, k4 = jax.random.split(key, 4)
    bound1 = 1.0 / jnp.sqrt(input_shape)
    bound2 = 1.0 / jnp.sqrt(hidden_units)
    # W1 stored as (in, out) so the kernel does x @ W1 directly.
    w1 = jax.random.uniform(k1, (input_shape, hidden_units), jnp.float32,
                            -bound1, bound1)
    b1 = jax.random.uniform(k2, (1, hidden_units), jnp.float32, -bound1, bound1)
    # W2 stored as a (1, H) row (same as torch fc2.weight).
    w2_row = jax.random.uniform(k3, (1, hidden_units), jnp.float32, -bound2, bound2)
    b2 = jax.random.uniform(k4, (1,), jnp.float32, -bound2, bound2)
    return w1, b1, w2_row, b2


if __name__ == "__main__":
    # Small shapes consistent with the forward: batch=2, channels=4, spatial=16.
    B, C, H, W = 2, 4, 16, 16
    input_shape = C * H * W          # 1024
    hidden_units = 32

    key = jax.random.PRNGKey(0)
    kx, kp = jax.random.split(key)
    x = jax.random.normal(kx, (B, C, H, W), jnp.float32)
    w1, b1, w2_row, b2 = init_params(kp, input_shape, hidden_units)

    out = cnn_model_forward(x, w1, b1, w2_row, b2)
    out = jax.block_until_ready(out)
    assert out.shape == (B, 1)

    # Reference using the same bf16 MXU-operand precision as the kernel.
    x_flat = x.reshape(B, -1)
    h_ref = jnp.dot(x_flat.astype(jnp.bfloat16), w1.astype(jnp.bfloat16),
                    preferred_element_type=jnp.float32)
    h_ref = jnp.maximum(h_ref + b1, 0.0)
    ref = jnp.sum(h_ref * w2_row, axis=-1, keepdims=True) + b2[0]
    assert jnp.allclose(out, ref, atol=2e-3, rtol=2e-3)

    # Sanity check against the full-f32 torch-equivalent math (looser tolerance
    # because fc1 operands are bf16 on the MXU).
    ref_f32 = jnp.maximum(x_flat @ w1 + b1, 0.0) @ w2_row.T + b2[0]
    assert jnp.allclose(out, ref_f32, atol=5e-2, rtol=5e-2)

    print("KERNEL_OK")
</pallas_src>

<mosaic_0001>
module attributes {stable_mosaic.version = 11 : i64} {
  func.func @mlp_kernel(%arg0: i32, %arg1: memref<2x1024xf32, #tpu.memory_space<vmem>>, %arg2: memref<1024x32xbf16, #tpu.memory_space<vmem>>, %arg3: memref<1x32xf32, #tpu.memory_space<vmem>>, %arg4: memref<1x32xf32, #tpu.memory_space<vmem>>, %arg5: memref<1xf32, #tpu.memory_space<smem>>, %arg6: memref<2x1xf32, #tpu.memory_space<vmem>>) attributes {dimension_semantics = [#tpu.dimension_semantics<parallel>], iteration_bounds = array<i64: 1>, scalar_prefetch = 0 : i64, scratch_operands = 0 : i64, tpu.core_type = #tpu.core_type<tc>, window_params = [{transform_indices = @transform_0, window_bounds = array<i64: 2, 1024>}, {pipeline_mode = #tpu.pipeline_mode<synchronous>, transform_indices = @transform_1, window_bounds = array<i64: 1024, 32>}, {pipeline_mode = #tpu.pipeline_mode<synchronous>, transform_indices = @transform_2, window_bounds = array<i64: 1, 32>}, {pipeline_mode = #tpu.pipeline_mode<synchronous>, transform_indices = @transform_3, window_bounds = array<i64: 1, 32>}, {transform_indices = @transform_4, window_bounds = array<i64: 1>}, {transform_indices = @transform_5, window_bounds = array<i64: 2, 1>}]} {
    %c0 = arith.constant 0 : index
    %c0_0 = arith.constant 0 : index
    %0 = vector.load %arg1[%c0, %c0_0] : memref<2x1024xf32, #tpu.memory_space<vmem>>, vector<2x1024xf32>
    %1 = arith.truncf %0 : vector<2x1024xf32> to vector<2x1024xbf16>
    %c0_1 = arith.constant 0 : index
    %c0_2 = arith.constant 0 : index
    %2 = vector.load %arg2[%c0_1, %c0_2] : memref<1024x32xbf16, #tpu.memory_space<vmem>>, vector<1024x32xbf16>
    %cst = arith.constant dense<0.000000e+00> : vector<2x32xf32>
    %3 = tpu.matmul %1, %2, %cst {dimension_numbers = #tpu.dot_dimension_numbers<[1], [0], [0], [1], [0, 0, 1, 1], [], []>} : vector<2x1024xbf16>, vector<1024x32xbf16>, vector<2x32xf32> -> vector<2x32xf32>
    %c0_3 = arith.constant 0 : index
    %c0_4 = arith.constant 0 : index
    %4 = vector.load %arg3[%c0_3, %c0_4] : memref<1x32xf32, #tpu.memory_space<vmem>>, vector<1x32xf32>
    %5 = vector.broadcast %4 : vector<1x32xf32> to vector<2x32xf32>
    %6 = arith.addf %3, %5 : vector<2x32xf32>
    %cst_5 = arith.constant 0.000000e+00 : f32
    %7 = vector.broadcast %cst_5 : f32 to vector<2x32xf32>
    %8 = arith.maximumf %6, %7 : vector<2x32xf32>
    %c0_6 = arith.constant 0 : index
    %c0_7 = arith.constant 0 : index
    %9 = vector.load %arg4[%c0_6, %c0_7] : memref<1x32xf32, #tpu.memory_space<vmem>>, vector<1x32xf32>
    %10 = vector.broadcast %9 : vector<1x32xf32> to vector<2x32xf32>
    %11 = arith.mulf %8, %10 : vector<2x32xf32>
    %cst_8 = arith.constant dense<0.000000e+00> : vector<2xf32>
    %12 = vector.multi_reduction <add>, %11, %cst_8 [1] : vector<2x32xf32> to vector<2xf32>
    %13 = vector.shape_cast %12 : vector<2xf32> to vector<2x1xf32>
    %c0_9 = arith.constant 0 : index
    %14 = memref.load %arg5[%c0_9] : memref<1xf32, #tpu.memory_space<smem>>
    %15 = vector.broadcast %14 : f32 to vector<2x1xf32>
    %16 = arith.addf %13, %15 : vector<2x1xf32>
    %c0_10 = arith.constant 0 : index
    %c0_11 = arith.constant 0 : index
    %17 = vector.load %arg6[%c0_10, %c0_11] : memref<2x1xf32, #tpu.memory_space<vmem>>, vector<2x1xf32>
    tpu.vector_store %arg6[%c0_10, %c0_11], %16 {strides = array<i32>} : memref<2x1xf32, #tpu.memory_space<vmem>>, vector<2x1xf32>,
    return
  }
  func.func @transform_0(%arg0: i32) -> (i32, i32) {
    %c0_i32 = arith.constant 0 : i32
    %c0_i32_0 = arith.constant 0 : i32
    return %arg0, %c0_i32 : i32, i32
  }
  func.func @transform_1(%arg0: i32) -> (i32, i32) {
    %c0_i32 = arith.constant 0 : i32
    %c0_i32_0 = arith.constant 0 : i32
    %c0_i32_1 = arith.constant 0 : i32
    return %c0_i32, %c0_i32_0 : i32, i32
  }
  func.func @transform_2(%arg0: i32) -> (i32, i32) {
    %c0_i32 = arith.constant 0 : i32
    %c0_i32_0 = arith.constant 0 : i32
    %c0_i32_1 = arith.constant 0 : i32
    return %c0_i32, %c0_i32_0 : i32, i32
  }
  func.func @transform_3(%arg0: i32) -> (i32, i32) {
    %c0_i32 = arith.constant 0 : i32
    %c0_i32_0 = arith.constant 0 : i32
    %c0_i32_1 = arith.constant 0 : i32
    return %c0_i32, %c0_i32_0 : i32, i32
  }
  func.func @transform_4(%arg0: i32) -> i32 {
    %c0_i32 = arith.constant 0 : i32
    %c0_i32_0 = arith.constant 0 : i32
    return %c0_i32 : i32
  }
  func.func @transform_5(%arg0: i32) -> (i32, i32) {
    %c0_i32 = arith.constant 0 : i32
    %c0_i32_0 = arith.constant 0 : i32
    return %arg0, %c0_i32 : i32, i32
  }
}

</mosaic_0001>

<bundles_post_ra>
// kernel: tpu_custom_call.1
= control target key start
LH: loop header
LB: loop body
LE: loop exit
PB: predicated region body
PF: predicated region fallthrough
CT: control target
= control target key end

     0   :  { %v998_v22 = vmov 1983009808   ;;  %v30_v24 = vlaneseq  ;;  %vm764_vm0 = vcmask 254976   ;;  %vm771_vm1 = vcmask 1024   ;;  %s1251_s1 = inlined_call_operand.vmem [shape: bf16[1024,32], index: 1, kind: input, shape index: {}]   ;;  %s1252_s0 = inlined_call_operand.vmem [shape: f32[2,1024], index: 0, kind: input, shape index: {}]   ;;  %s1253_s2 = inlined_call_operand.vmem [shape: f32[1,32], index: 2, kind: input, shape index: {}]   ;;  %s1254_s3 = inlined_call_operand.vmem [shape: f32[1,32], index: 3, kind: input, shape index: {}]   ;;  %s1255_s4 = inlined_call_operand.<no memory space> [shape: f32[1], index: 4, kind: input, shape index: {}]   ;;  %s1256_s5 = inlined_call_operand.vmem [shape: f32[2,1], index: 5, kind: output, shape index: {}]  }
   0x1   :  { %v932_v0 = vld [vmem:[%s1251_s1 + $0x40] sm:$0xff]   ;;  %v936_v4 = vld [vmem:[%s1251_s1 + $0x48] sm:$0xff]   ;;  %v940_v8 = vld [vmem:[%s1251_s1 + $0x50] sm:$0xff]   ;;  %v28_v23 = vunpack.c.l.s4 %v998_v22 }
   0x2   :  { %v933_v1 = vld [vmem:[%s1251_s1 + $0xc0] sm:$0xff]   ;;  %843 = vmatprep.subr.bf16.mxu0 %v932_v0  ;;  %v937_v5 = vld [vmem:[%s1251_s1 + $0xc8] sm:$0xff]   ;;  %v941_v9 = vld [vmem:[%s1251_s1 + $0xd0] sm:$0xff]   ;;  %v31_v30 = vshrl.u32 %v30_v24, 7 }
   0x3   :  { %v934_v2 = vld [vmem:[%s1251_s1] sm:$0xff]   ;;  %865 = vmatprep.subr.bf16.mxu1 %v933_v1  ;;  %v938_v6 = vld [vmem:[%s1251_s1 + $0x8] sm:$0xff]   ;;  %v942_v10 = vld [vmem:[%s1251_s1 + $0x10] sm:$0xff]   ;;  %v29_v29 = vunpack.c.0.s8 %v28_v23 }
   0x4   :  { %v935_v3 = vld [vmem:[%s1251_s1 + $0x80] sm:$0xff]   ;;  %844 = vmatpush3.bf16.msra.mxu0 %v934_v2  ;;  %v939_v7 = vld [vmem:[%s1251_s1 + $0x88] sm:$0xff]   ;;  %v943_v11 = vld [vmem:[%s1251_s1 + $0x90] sm:$0xff]  }
   0x5   :  { %866 = vmatpush3.bf16.msra.mxu1 %v935_v3  ;;  %845 = vmatprep.subr.bf16.mxu0 %v936_v4  ;;  %v944_v12 = vld [vmem:[%s1251_s1 + $0x58] sm:$0xff]   ;;  %v948_v16 = vld [vmem:[%s1251_s1 + $0x60] sm:$0xff]   ;;  %v952_v20 = vld [vmem:[%s1251_s1 + $0x68] sm:$0xff]   ;;  %v32_v35 = vsub.s32 %v29_v29, %v31_v30 }
   0x6   :  { %867 = vmatprep.subr.bf16.mxu1 %v937_v5  ;;  %v945_v13 = vld [vmem:[%s1251_s1 + $0xd8] sm:$0xff]   ;;  %v949_v17 = vld [vmem:[%s1251_s1 + $0xe0] sm:$0xff]   ;;  %v953_v21 = vld [vmem:[%s1251_s1 + $0xe8] sm:$0xff]  }
   0x7   :  { %v946_v14 = vld [vmem:[%s1251_s1 + $0x18] sm:$0xff]   ;;  %v950_v18 = vld [vmem:[%s1251_s1 + $0x20] sm:$0xff]   ;;  %v954_v25 = vld [vmem:[%s1251_s1 + $0x28] sm:$0xff]  }
   0x8   :  { %846 = vmatpush3.bf16.msra.mxu0 %v938_v6  ;;  %v947_v15 = vld [vmem:[%s1251_s1 + $0x98] sm:$0xff]   ;;  %v951_v19 = vld [vmem:[%s1251_s1 + $0xa0] sm:$0xff]   ;;  %v955_v26 = vld [vmem:[%s1251_s1 + $0xa8] sm:$0xff]  }
   0x9   :  { %868 = vmatpush3.bf16.msra.mxu1 %v939_v7  ;;  %847 = vmatprep.subr.bf16.mxu0 %v940_v8  ;;  %v956_v27 = vld [vmem:[%s1251_s1 + $0x70] sm:$0xff]   ;;  %v960_v33 = vld [vmem:[%s1251_s1 + $0x78] sm:$0xff]   ;;  %v22_v38 = vld [vmem:[%s1252_s0] sm:$0xff] }
   0xa   :  { %869 = vmatprep.subr.bf16.mxu1 %v941_v9  ;;  %v957_v28 = vld [vmem:[%s1251_s1 + $0xf0] sm:$0xff]   ;;  %v961_v34 = vld [vmem:[%s1251_s1 + $0xf8] sm:$0xff]   ;;  %v23_v39 = vld [vmem:[%s1252_s0 + $0x8] sm:$0xff]  ;;  %v33_v40 = vrot.slane %v22_v38, %v32_v35  ;;  %v26_v42 = vcombine.high %v22_v38, %v22_v38 }
   0xb   :  { %v958_v31 = vld [vmem:[%s1251_s1 + $0x30] sm:$0xff]   ;;  %v962_v36 = vld [vmem:[%s1251_s1 + $0x38] sm:$0xff]   ;;  %v43_v41 = vcombine.high %v23_v39, %v23_v39  ;;  %v966_v43 = vld [vmem:[%s1251_s1 + $0x140] sm:$0xff]   ;;  %v1134_v44 = vrot.slane %v23_v39, %v32_v35 }
   0xc   :  { %848 = vmatpush3.bf16.msra.mxu0 %v942_v10  ;;  %v959_v32 = vld [vmem:[%s1251_s1 + $0xb0] sm:$0xff]   ;;  %v963_v37 = vld [vmem:[%s1251_s1 + $0xb8] sm:$0xff]   ;;  %v967_v45 = vld [vmem:[%s1251_s1 + $0x1c0] sm:$0xff]   ;;  %v41_v46 = vcombine.high %v33_v40, %v33_v40  ;;  %v40_v47 = vrot.slane %v26_v42, %v32_v35  ;;  %v68_v49 = vpack.c.bf16 %v33_v40, %v33_v40 }
   0xd   :  { %870 = vmatpush3.bf16.msra.mxu1 %v943_v11  ;;  %849 = vmatprep.subr.bf16.mxu0 %v944_v12  ;;  %v58_v48 = vcombine.high %v1134_v44, %v1134_v44  ;;  %v1141_v50 = vrot.slane %v43_v41, %v32_v35  ;;  %v968_v53 = vld [vmem:[%s1251_s1 + $0x100] sm:$0xff]   ;;  %v970_v55 = vld [vmem:[%s1251_s1 + $0x148] sm:$0xff]   ;;  %v974_v63 = vld [vmem:[%s1251_s1 + $0x150] sm:$0xff]   ;;  %v72_v24 = vpack.c.bf16 %v1134_v44, %v1134_v44 }
   0xe   :  { %871 = vmatprep.subr.bf16.mxu1 %v945_v13  ;;  %v69_v51 = vpack.c.bf16 %v41_v46, %v41_v46  ;;  %v42_v52 = vcombine.high %v40_v47, %v40_v47  ;;  %v70_v54 = vpack.c.bf16 %v40_v47, %v40_v47  ;;  %v969_v58 = vld [vmem:[%s1251_s1 + $0x180] sm:$0xff]   ;;  %v971_v60 = vld [vmem:[%s1251_s1 + $0x1c8] sm:$0xff]   ;;  %v975_v1 = vld [vmem:[%s1251_s1 + $0x1d0] sm:$0xff]  }
   0xf   :  { %v59_v56 = vcombine.high %v1141_v50, %v1141_v50  ;;  %v73_v59 = vpack.c.bf16 %v58_v48, %v58_v48  ;;  %v972_v62 = vld [vmem:[%s1251_s1 + $0x108] sm:$0xff]   ;;  %v976_v2 = vld [vmem:[%s1251_s1 + $0x110] sm:$0xff]   ;;  %v978_v3 = vld [vmem:[%s1251_s1 + $0x158] sm:$0xff]  }
  0x10   :  { %850 = vmatpush3.bf16.msra.mxu0 %v946_v14  ;;  %627 = vmatprep.mubr.bf16.mxu0 %v69_v51  ;;  %v71_v57 = vpack.c.bf16 %v42_v52, %v42_v52  ;;  %v973_v0 = vld [vmem:[%s1251_s1 + $0x188] sm:$0xff]   ;;  %v977_v4 = vld [vmem:[%s1251_s1 + $0x190] sm:$0xff]   ;;  %v979_v5 = vld [vmem:[%s1251_s1 + $0x1d8] sm:$0xff]  }
  0x11   :  { %872 = vmatpush3.bf16.msra.mxu1 %v947_v15  ;;  %851 = vmatprep.subr.bf16.mxu0 %v948_v16  ;;  %v75_v61 = vpack.c.bf16 %v59_v56, %v59_v56  ;;  %v980_v6 = vld [vmem:[%s1251_s1 + $0x118] sm:$0xff]   ;;  %v982_v7 = vld [vmem:[%s1251_s1 + $0x160] sm:$0xff]   ;;  %v986_v11 = vld [vmem:[%s1251_s1 + $0x168] sm:$0xff]  }
  0x12   :  { %873 = vmatprep.subr.bf16.mxu1 %v949_v17  ;;  %667 = vmatprep.mubr.bf16.mxu1 %v71_v57  ;;  %v981_v8 = vld [vmem:[%s1251_s1 + $0x198] sm:$0xff]   ;;  %v983_v9 = vld [vmem:[%s1251_s1 + $0x1e0] sm:$0xff]   ;;  %v987_v13 = vld [vmem:[%s1251_s1 + $0x1e8] sm:$0xff]  }
  0x13   :  { %v984_v10 = vld [vmem:[%s1251_s1 + $0x120] sm:$0xff]   ;;  %v988_v14 = vld [vmem:[%s1251_s1 + $0x128] sm:$0xff]   ;;  %v990_v15 = vld [vmem:[%s1251_s1 + $0x170] sm:$0xff]  }
  0x14   :  { %852 = vmatpush3.bf16.msra.mxu0 %v950_v18  ;;  %v985_v12 = vld [vmem:[%s1251_s1 + $0x1a0] sm:$0xff]   ;;  %v989_v16 = vld [vmem:[%s1251_s1 + $0x1a8] sm:$0xff]   ;;  %v991_v17 = vld [vmem:[%s1251_s1 + $0x1f0] sm:$0xff]  }
  0x15   :  { %874 = vmatpush3.bf16.msra.mxu1 %v951_v19  ;;  %853 = vmatprep.subr.bf16.mxu0 %v952_v20  ;;  %v992_v18 = vld [vmem:[%s1251_s1 + $0x130] sm:$0xff]   ;;  %v994_v19 = vld [vmem:[%s1251_s1 + $0x178] sm:$0xff]   ;;  %v842_v51 = vld [vmem:[%s1254_s3] ss:$0 sm:$0xff] }
  0x16   :  { %875 = vmatprep.subr.bf16.mxu1 %v953_v21  ;;  %v993_v20 = vld [vmem:[%s1251_s1 + $0x1b0] sm:$0xff]   ;;  %v995_v21 = vld [vmem:[%s1251_s1 + $0x1f8] sm:$0xff]  }
  0x17   :  { %v996_v22 = vld [vmem:[%s1251_s1 + $0x138] sm:$0xff]  }
  0x18   :  { %854 = vmatpush3.bf16.msra.mxu0 %v954_v25  ;;  %v997_v23 = vld [vmem:[%s1251_s1 + $0x1b8] sm:$0xff]   ;;  %v74_v25 = vpack.c.bf16 %v1141_v50, %v1141_v50 }
  0x19   :  { %876 = vmatpush3.bf16.msra.mxu1 %v955_v26  ;;  %855 = vmatprep.subr.bf16.mxu0 %v956_v27  ;;  %v777_v27 = vld [vmem:[%s1253_s2] ss:$0 sm:$0xff] }
  0x1a   :  { %877 = vmatprep.subr.bf16.mxu1 %v957_v28 }
  0x1c   :  { %856 = vmatpush3.bf16.msra.mxu0 %v958_v31 }
  0x1d   :  { %878 = vmatpush3.bf16.msra.mxu1 %v959_v32  ;;  %857 = vmatprep.subr.bf16.mxu0 %v960_v33 }
  0x1e   :  { %879 = vmatprep.subr.bf16.mxu1 %v961_v34 }
  0x20   :  { %858 = vmatpush3.bf16.msra.mxu0 %v962_v36 }
  0x21   :  { %880 = vmatpush3.bf16.msra.mxu1 %v963_v37  ;;  %887 = vmatprep.subr.bf16.mxu0 %v966_v43 }
  0x22   :  { %909 = vmatprep.subr.bf16.mxu1 %v967_v45 }
  0x23   :  { %628 = vmatmul.mubr.bf16.vlgmr.msra.gmra.mrb[0].mxu0 %v68_v49 }
  0x24   :  { %888 = vmatpush3.bf16.msra.mxu0 %v968_v53  ;;  %668 = vmatmul.mubr.bf16.vlgmr.msra.gmra.mrb[0].mxu1 %v70_v54 }
  0x25   :  { %889 = vmatprep.subr.bf16.mxu0 %v970_v55  ;;  %910 = vmatpush3.bf16.msra.mxu1 %v969_v58  ;;  %v769_v55 = vstv %s1255_s4 }
  0x26   :  { %707 = vmatprep.mubr.bf16.mxu0 %v73_v59  ;;  %911 = vmatprep.subr.bf16.mxu1 %v971_v60 }
  0x27   :  { %747 = vmatprep.mubr.bf16.mxu1 %v75_v61 }
  0x28   :  { %890 = vmatpush3.bf16.msra.mxu0 %v972_v62 }
  0x29   :  { %891 = vmatprep.subr.bf16.mxu0 %v974_v63  ;;  %912 = vmatpush3.bf16.msra.mxu1 %v973_v0 }
  0x2a   :  { %913 = vmatprep.subr.bf16.mxu1 %v975_v1 }
  0x2c   :  { %892 = vmatpush3.bf16.msra.mxu0 %v976_v2 }
  0x2d   :  { %893 = vmatprep.subr.bf16.mxu0 %v978_v3  ;;  %914 = vmatpush3.bf16.msra.mxu1 %v977_v4 }
  0x2e   :  { %915 = vmatprep.subr.bf16.mxu1 %v979_v5 }
  0x30   :  { %894 = vmatpush3.bf16.msra.mxu0 %v980_v6 }
  0x31   :  { %895 = vmatprep.subr.bf16.mxu0 %v982_v7  ;;  %916 = vmatpush3.bf16.msra.mxu1 %v981_v8 }
  0x32   :  { %917 = vmatprep.subr.bf16.mxu1 %v983_v9 }
  0x34   :  { %896 = vmatpush3.bf16.msra.mxu0 %v984_v10 }
  0x35   :  { %897 = vmatprep.subr.bf16.mxu0 %v986_v11  ;;  %918 = vmatpush3.bf16.msra.mxu1 %v985_v12 }
  0x36   :  { %919 = vmatprep.subr.bf16.mxu1 %v987_v13 }
  0x38   :  { %898 = vmatpush3.bf16.msra.mxu0 %v988_v14 }
  0x39   :  { %899 = vmatprep.subr.bf16.mxu0 %v990_v15  ;;  %920 = vmatpush3.bf16.msra.mxu1 %v989_v16 }
  0x3a   :  { %921 = vmatprep.subr.bf16.mxu1 %v991_v17 }
  0x3c   :  { %900 = vmatpush3.bf16.msra.mxu0 %v992_v18 }
  0x3d   :  { %901 = vmatprep.subr.bf16.mxu0 %v994_v19  ;;  %922 = vmatpush3.bf16.msra.mxu1 %v993_v20 }
  0x3e   :  { %923 = vmatprep.subr.bf16.mxu1 %v995_v21 }
  0x40   :  { %902 = vmatpush3.bf16.msra.mxu0 %v996_v22 }
  0x41   :  { %924 = vmatpush3.bf16.msra.mxu1 %v997_v23 }
  0x43   :  { %708 = vmatmul.mubr.bf16.vlgmr.msra.gmra.mrb[4].mxu0 %v72_v24 }
  0x44   :  { %748 = vmatmul.mubr.bf16.vlgmr.msra.gmra.mrb[4].mxu1 %v74_v25 }
  0xf6   :  { %v859_v26 = vpop.f32.mrb[0].mxu0 }
  0xf7   :  { %v860_v28 = vpop.f32.mrb[1].mxu0  ;;  %v881_v29 = vpop.f32.mrb[0].mxu1 }
  0xf8   :  { %v861_v30 = vadd.f32 %v860_v28, %v859_v26  ;;  %v862_v31 = vpop.f32.mrb[2].mxu0  ;;  %v882_v32 = vpop.f32.mrb[1].mxu1 }
  0xf9   :  { %v863_v33 = vpop.f32.mrb[3].mxu0  ;;  %v883_v35 = vadd.f32 %v882_v32, %v881_v29  ;;  %v884_v36 = vpop.f32.mrb[2].mxu1 }
  0xfa   :  { %v630_v34 = vadd.f32 %v861_v30, %v777_v27  ;;  %v885_v37 = vpop.f32.mrb[3].mxu1 }
  0xfc   :  { %v670_v38 = vadd.f32 %v883_v35, %v630_v34 }
 0x116   :  { %v903_v39 = vpop.f32.mrb[4].mxu0 }
 0x117   :  { %v904_v40 = vpop.f32.mrb[5].mxu0  ;;  %v925_v41 = vpop.f32.mrb[4].mxu1 }
 0x118   :  { %v905_v42 = vadd.f32 %v904_v40, %v903_v39  ;;  %v906_v43 = vpop.f32.mrb[6].mxu0  ;;  %v926_v44 = vpop.f32.mrb[5].mxu1 }
 0x119   :  { %v907_v45 = vpop.f32.mrb[7].mxu0  ;;  %v927_v47 = vadd.f32 %v926_v44, %v925_v41  ;;  %v928_v48 = vpop.f32.mrb[6].mxu1 }
 0x11a   :  { %v710_v46 = vadd.f32 %v905_v42, %v670_v38  ;;  %v929_v49 = vpop.f32.mrb[7].mxu1 }
 0x11c   :  { %v750_v50 = vadd.f32 %v927_v47, %v710_v46 }
 0x11e   :  { %v755_v52 = vmax.f32 %v750_v50, 0.0 }
 0x120   :  { %v763_v53 = vmul.f32 %v842_v51, %v755_v52 }
 0x122   :  { %v765_v54 = vsel %vm764_vm0, %v763_v53, 0.0 }
 0x123   :  { %766 = vadd.xlane.f32.xlu0 %v765_v54 }
 0x1b0   :  { %v767_v56 = vpop.xlane.xlu0 %766 }
 0x1b1   :  { %v770_v57 = vadd.f32 %v769_v55, %v767_v56 }
 0x1b3   :  { %772 = vst.msk [vmem:[%s1256_s5] sm:$0x3] %vm771_vm1, %v770_v57 }

</bundles_post_ra>
